<compile_context>
chip_gen: v7x
topology: tpu7x:2x2x1
jax: 0.10.0
libtpu: 0.0.40
codegen_flags: <defaults>
</compile_context>

<pallas_src>
import functools

import jax
import jax.numpy as jnp
from jax import lax
from jax.experimental import pallas as pl
from jax.experimental.pallas import tpu as pltpu


def _round_up(x, m):
    return (x + m - 1) // m * m


def _seq2seq_kernel(ids_ref, lut_ref, w2_ref, b2_ref, out_ref, acc_ref):
    """One (batch-tile i, seq-tile k) grid step.

    ids_ref : [tb, ts, 1]     int32  token ids (-1 = padding sentinel)
    lut_ref : [V_pad, H_pad]  bf16   ReLU(table @ w1 + b1) lookup table  (resident)
    w2_ref  : [H_pad, C_pad]  bf16   output weight                        (resident)
    b2_ref  : [1, C_pad]      f32    output bias                          (resident)
    out_ref : [tb, C_pad]     f32    logits (same block across the seq axis)
    acc_ref : [tb, H_pad]     f32    running max over the sequence (scratch)
    """
    tb, ts, _ = ids_ref.shape
    v_pad, h_pad = lut_ref.shape
    k = pl.program_id(1)

    # Post-ReLU values are >= 0, so 0 is a correct identity for the running max.
    @pl.when(k == 0)
    def _():
        acc_ref[...] = jnp.zeros_like(acc_ref)

    # --- fused gather of ReLU(emb @ w1 + b1): one-hot matmul against the LUT -----
    # Sentinel ids (-1) match no iota value -> all-zero one-hot row -> h = 0 (identity),
    # so no padding mask is needed.
    ids = ids_ref[...]                                                   # [tb, ts, 1]
    v_iota = lax.broadcasted_iota(jnp.int32, (1, 1, v_pad), 2)           # broadcast in ==
    onehot = (ids == v_iota).astype(jnp.bfloat16)                        # [tb, ts, V_pad]
    onehot = onehot.reshape(tb * ts, v_pad)                              # merge leading dims
    h = jnp.dot(onehot, lut_ref[...],
                preferred_element_type=jnp.float32)                      # exact bf16 selection
    h = h.reshape(tb, ts, h_pad)

    # --- online max over the sequence axis ----------------------------------------
    acc_ref[...] = jnp.maximum(acc_ref[...], jnp.max(h, axis=1))

    # --- output_layer at the last seq tile -----------------------------------------
    @pl.when(k == pl.num_programs(1) - 1)
    def _():
        pooled = acc_ref[...].astype(jnp.bfloat16)                       # lossless (bf16 LUT values)
        out = jnp.dot(pooled, w2_ref[...], preferred_element_type=jnp.float32)
        out_ref[...] = (out + b2_ref[...]).astype(out_ref.dtype)


def custom_seq2seq_forward(input_seq, params):
    """Pallas-TPU forward of CustomSeq2SeqModel.

    input_seq: list (length B) of int32 arrays of shape [S] (token ids).
    Returns logits of shape [B, num_classes], matching the PyTorch module.
    """
    # torch.stack(input_seq, dim=1) gives [S, B]; we keep the transposed batch-major
    # [B, S] layout (same math) so each accumulator row maps to one example.
    ids = jnp.stack(input_seq, axis=0).astype(jnp.int32)                 # [B, S]
    B, S = ids.shape
    V, E = params["embedding"].shape
    H = params["w1"].shape[1]
    C = params["w2"].shape[1]

    # ---- lane-dense (128) padding of the feature dims ---------------------------
    V_pad = _round_up(V, 128)
    H_pad = _round_up(H, 128)
    C_pad = _round_up(C, 128)

    bf16 = jnp.bfloat16
    # Fold Embedding + Linear1 + bias + ReLU into a per-token LUT (f32 compute, one bf16 cast).
    lut_f32 = jnp.maximum(
        params["embedding"].astype(jnp.float32) @ params["w1"].astype(jnp.float32)
        + params["b1"].astype(jnp.float32), 0.0)                         # [V, H]
    lut = jnp.zeros((V_pad, H_pad), bf16).at[:V, :H].set(lut_f32.astype(bf16))
    w2 = jnp.zeros((H_pad, C_pad), bf16).at[:H, :C].set(params["w2"].astype(bf16))
    b2 = jnp.zeros((1, C_pad), jnp.float32).at[0, :C].set(params["b2"].astype(jnp.float32))

    # ---- tile sizes ---------------------------------------------------------------
    if S > 128:
        ts = 128                                 # seq tile
        S_pad = _round_up(S, ts)
    else:
        S_pad = _round_up(S, 8)
        ts = S_pad                               # single seq tile (full-dim block is legal)

    # Target ~1024 MXU rows (tb*ts) per grid step to amortize per-step overhead ...
    tb = max(8, (1024 // ts) // 8 * 8)
    B_pad8 = _round_up(B, 8)
    tb = min(tb, B_pad8)
    # ... but keep >= 2 batch tiles whenever possible so v7x's second TC gets work.
    if B_pad8 >= 16 and B_pad8 // tb < 2:
        tb = max(8, (B_pad8 // 2) // 8 * 8)
    B_pad = _round_up(B, tb)
    gb, gs = B_pad // tb, S_pad // ts

    # Sentinel padding: -1 matches no vocab id -> zero one-hot row -> h = 0 (max identity).
    ids_p = jnp.full((B_pad, S_pad, 1), -1, jnp.int32).at[:B, :S, 0].set(ids)

    flops = 2 * B_pad * S_pad * V_pad * H_pad + 2 * B_pad * H_pad * C_pad
    bytes_accessed = (ids_p.size * 4 + lut.size * 2 + w2.size * 2
                      + b2.size * 4 + B_pad * C_pad * 4)

    out = pl.pallas_call(
        _seq2seq_kernel,
        out_shape=jax.ShapeDtypeStruct((B_pad, C_pad), jnp.float32),
        grid_spec=pltpu.PrefetchScalarGridSpec(
            num_scalar_prefetch=0,
            grid=(gb, gs),                                         # seq (reduction) axis last
            in_specs=[
                pl.BlockSpec((tb, ts, 1), lambda i, k: (i, k, 0)),    # ids tile
                pl.BlockSpec((V_pad, H_pad), lambda i, k: (0, 0)),    # folded LUT (resident)
                pl.BlockSpec((H_pad, C_pad), lambda i, k: (0, 0)),    # w2 (resident)
                pl.BlockSpec((1, C_pad), lambda i, k: (0, 0)),        # b2 (resident)
            ],
            out_specs=pl.BlockSpec((tb, C_pad), lambda i, k: (i, 0)),
            scratch_shapes=[pltpu.VMEM((tb, H_pad), jnp.float32)],
        ),
        compiler_params=pltpu.CompilerParams(
            dimension_semantics=("parallel", "arbitrary"),   # batch tiles across TCs on v7x
            vmem_limit_bytes=32 * 1024 * 1024,               # safe on v5e/v6e/v7x; usage ~1 MiB
        ),
        cost_estimate=pl.CostEstimate(
            flops=flops, transcendentals=0, bytes_accessed=bytes_accessed),
    )(ids_p, lut, w2, b2)

    return out[:B, :C]


def reference_forward(input_seq, params):
    """Pure-JAX reference with the same quantization scheme as the kernel (bf16 LUT + bf16 w2)."""
    ids = jnp.stack(input_seq, axis=1)                                   # [S, B] (torch layout)
    lut = jnp.maximum(params["embedding"] @ params["w1"] + params["b1"], 0.0)
    lut = lut.astype(jnp.bfloat16).astype(jnp.float32)
    w2 = params["w2"].astype(jnp.bfloat16).astype(jnp.float32)
    h = jnp.take(lut, ids, axis=0)                                       # [S, B, H]
    pooled = jnp.max(h, axis=0)                                          # [B, H]
    pooled = pooled.astype(jnp.bfloat16).astype(jnp.float32)
    return pooled @ w2 + params["b2"]


def reference_forward_f32(input_seq, params):
    """Full-f32 reference (matches the PyTorch module exactly)."""
    ids = jnp.stack(input_seq, axis=1)
    emb = jnp.take(params["embedding"], ids, axis=0)
    h = jnp.maximum(emb @ params["w1"] + params["b1"], 0.0)
    pooled = jnp.max(h, axis=0)
    return pooled @ params["w2"] + params["b2"]


if __name__ == "__main__":
    vocab_size, emb_size, hidden_size, num_classes = 50, 32, 32, 2

    key = jax.random.PRNGKey(0)
    k_emb, k_w1, k_b1, k_w2, k_b2, k_ids = jax.random.split(key, 6)

    # Weights stored as [in, out] (transposed vs nn.Linear's [out, in]): same math x @ W + b.
    params = {
        "embedding": jax.random.normal(k_emb, (vocab_size, emb_size), jnp.float32),
        "w1": 0.1 * jax.random.normal(k_w1, (emb_size, hidden_size), jnp.float32),
        "b1": 0.1 * jax.random.normal(k_b1, (hidden_size,), jnp.float32),
        "w2": 0.1 * jax.random.normal(k_w2, (hidden_size, num_classes), jnp.float32),
        "b2": 0.1 * jax.random.normal(k_b2, (num_classes,), jnp.float32),
    }

    # cfg 0: small shapes, exercises batch tiling + sentinel seq padding, grid = (2, 1)
    # cfg 1: long sequence, exercises multi-step online-max over the seq axis, grid = (1, 3)
    # cfg 2: larger batch / short seq, exercises the tb-scaling path (tb > 8, gb >= 2)
    for cfg_i, (B, S) in enumerate([(10, 12), (4, 260), (40, 20)]):
        k_cfg = jax.random.fold_in(k_ids, cfg_i)
        input_seq = [
            jax.random.randint(jax.random.fold_in(k_cfg, b), (S,), 0, vocab_size, jnp.int32)
            for b in range(B)
        ]

        out = jax.block_until_ready(custom_seq2seq_forward(input_seq, params))
        ref = jax.block_until_ready(reference_forward(input_seq, params))
        ref32 = jax.block_until_ready(reference_forward_f32(input_seq, params))

        assert out.shape == (B, num_classes)
        err = float(jnp.max(jnp.abs(out - ref)))
        assert jnp.allclose(out, ref, atol=1e-2, rtol=1e-2), \
            f"cfg{cfg_i}: mismatch vs bf16-LUT reference (max err {err:.2e})"
        err32 = float(jnp.max(jnp.abs(out - ref32)))
        assert jnp.allclose(out, ref32, atol=1e-1, rtol=1e-1), \
            f"cfg{cfg_i}: mismatch vs f32 reference (max err {err32:.2e})"

    print("KERNEL_OK")
</pallas_src>

<mosaic_0001>
module attributes {stable_mosaic.version = 11 : i64} {
  func.func @_seq2seq_kernel(%arg0: i32, %arg1: i32, %arg2: memref<8x16x1xi32, #tpu.memory_space<vmem>>, %arg3: memref<128x128xbf16, #tpu.memory_space<vmem>>, %arg4: memref<128x128xbf16, #tpu.memory_space<vmem>>, %arg5: memref<1x128xf32, #tpu.memory_space<vmem>>, %arg6: memref<8x128xf32, #tpu.memory_space<vmem>>, %arg7: memref<8x128xf32, #tpu.memory_space<vmem>>) attributes {dimension_semantics = [#tpu.dimension_semantics<parallel>, #tpu.dimension_semantics<arbitrary>], iteration_bounds = array<i64: 2, 1>, scalar_prefetch = 0 : i64, scratch_operands = 1 : i64, tpu.core_type = #tpu.core_type<tc>, window_params = [{transform_indices = @transform_0, window_bounds = array<i64: 8, 16, 1>}, {pipeline_mode = #tpu.pipeline_mode<synchronous>, transform_indices = @transform_1, window_bounds = array<i64: 128, 128>}, {pipeline_mode = #tpu.pipeline_mode<synchronous>, transform_indices = @transform_2, window_bounds = array<i64: 128, 128>}, {pipeline_mode = #tpu.pipeline_mode<synchronous>, transform_indices = @transform_3, window_bounds = array<i64: 1, 128>}, {transform_indices = @transform_4, window_bounds = array<i64: 8, 128>}]} {
    %c0_i32 = arith.constant 0 : i32
    %0 = arith.cmpi eq, %arg1, %c0_i32 : i32
    %1 = arith.extui %0 : i1 to i32
    %c0_i32_0 = arith.constant 0 : i32
    %2 = arith.cmpi ne, %1, %c0_i32_0 : i32
    scf.if %2 {
      %cst_12 = arith.constant 0.000000e+00 : f32
      %22 = vector.broadcast %cst_12 : f32 to vector<8x128xf32>
      %c0_13 = arith.constant 0 : index
      %c0_14 = arith.constant 0 : index
      %23 = vector.load %arg7[%c0_13, %c0_14] : memref<8x128xf32, #tpu.memory_space<vmem>>, vector<8x128xf32>
      tpu.vector_store %arg7[%c0_13, %c0_14], %22 {strides = array<i32>} : memref<8x128xf32, #tpu.memory_space<vmem>>, vector<8x128xf32>,
    } else {
    }
    %c0 = arith.constant 0 : index
    %c0_1 = arith.constant 0 : index
    %c0_2 = arith.constant 0 : index
    %3 = vector.load %arg2[%c0, %c0_1, %c0_2] : memref<8x16x1xi32, #tpu.memory_space<vmem>>, vector<8x16x1xi32>
    %4 = tpu.iota {dimensions = array<i32: 2>} : vector<1x1x128xi32>
    %5 = vector.broadcast %3 : vector<8x16x1xi32> to vector<8x16x128xi32>
    %6 = vector.broadcast %4 : vector<1x1x128xi32> to vector<8x16x128xi32>
    %7 = arith.cmpi eq, %5, %6 : vector<8x16x128xi32>
    %8 = arith.extui %7 : vector<8x16x128xi1> to vector<8x16x128xi32>
    %9 = arith.sitofp %8 : vector<8x16x128xi32> to vector<8x16x128xf32>
    %10 = arith.truncf %9 : vector<8x16x128xf32> to vector<8x16x128xbf16>
    %11 = vector.shape_cast %10 : vector<8x16x128xbf16> to vector<128x128xbf16>
    %c0_3 = arith.constant 0 : index
    %c0_4 = arith.constant 0 : index
    %12 = vector.load %arg3[%c0_3, %c0_4] : memref<128x128xbf16, #tpu.memory_space<vmem>>, vector<128x128xbf16>
    %cst = arith.constant dense<0.000000e+00> : vector<128x128xf32>
    %13 = tpu.matmul %11, %12, %cst {dimension_numbers = #tpu.dot_dimension_numbers<[1], [0], [0], [1], [0, 0, 1, 1], [], []>} : vector<128x128xbf16>, vector<128x128xbf16>, vector<128x128xf32> -> vector<128x128xf32>
    %14 = vector.shape_cast %13 : vector<128x128xf32> to vector<8x16x128xf32>
    %c0_5 = arith.constant 0 : index
    %c0_6 = arith.constant 0 : index
    %15 = vector.load %arg7[%c0_5, %c0_6] : memref<8x128xf32, #tpu.memory_space<vmem>>, vector<8x128xf32>
    %cst_7 = arith.constant dense<0xFF800000> : vector<8x128xf32>
    %16 = vector.multi_reduction <maximumf>, %14, %cst_7 [1] : vector<8x16x128xf32> to vector<8x128xf32>
    %17 = arith.maximumf %15, %16 : vector<8x128xf32>
    %c0_8 = arith.constant 0 : index
    %c0_9 = arith.constant 0 : index
    %18 = vector.load %arg7[%c0_8, %c0_9] : memref<8x128xf32, #tpu.memory_space<vmem>>, vector<8x128xf32>
    tpu.vector_store %arg7[%c0_8, %c0_9], %17 {strides = array<i32>} : memref<8x128xf32, #tpu.memory_space<vmem>>, vector<8x128xf32>,
    %c0_i32_10 = arith.constant 0 : i32
    %19 = arith.cmpi eq, %arg1, %c0_i32_10 : i32
    %20 = arith.extui %19 : i1 to i32
    %c0_i32_11 = arith.constant 0 : i32
    %21 = arith.cmpi ne, %20, %c0_i32_11 : i32
    scf.if %21 {
      %c0_12 = arith.constant 0 : index
      %c0_13 = arith.constant 0 : index
      %22 = vector.load %arg7[%c0_12, %c0_13] : memref<8x128xf32, #tpu.memory_space<vmem>>, vector<8x128xf32>
      %23 = arith.truncf %22 : vector<8x128xf32> to vector<8x128xbf16>
      %c0_14 = arith.constant 0 : index
      %c0_15 = arith.constant 0 : index
      %24 = vector.load %arg4[%c0_14, %c0_15] : memref<128x128xbf16, #tpu.memory_space<vmem>>, vector<128x128xbf16>
      %cst_16 = arith.constant dense<0.000000e+00> : vector<8x128xf32>
      %25 = tpu.matmul %23, %24, %cst_16 {dimension_numbers = #tpu.dot_dimension_numbers<[1], [0], [0], [1], [0, 0, 1, 1], [], []>} : vector<8x128xbf16>, vector<128x128xbf16>, vector<8x128xf32> -> vector<8x128xf32>
      %c0_17 = arith.constant 0 : index
      %c0_18 = arith.constant 0 : index
      %26 = vector.load %arg5[%c0_17, %c0_18] : memref<1x128xf32, #tpu.memory_space<vmem>>, vector<1x128xf32>
      %27 = vector.broadcast %26 : vector<1x128xf32> to vector<8x128xf32>
      %28 = arith.addf %25, %27 : vector<8x128xf32>
      %c0_19 = arith.constant 0 : index
      %c0_20 = arith.constant 0 : index
      %29 = vector.load %arg6[%c0_19, %c0_20] : memref<8x128xf32, #tpu.memory_space<vmem>>, vector<8x128xf32>
      tpu.vector_store %arg6[%c0_19, %c0_20], %28 {strides = array<i32>} : memref<8x128xf32, #tpu.memory_space<vmem>>, vector<8x128xf32>,
    } else {
    }
    return
  }
  func.func @transform_0(%arg0: i32, %arg1: i32) -> (i32, i32, i32) {
    %c0_i32 = arith.constant 0 : i32
    %c0_i32_0 = arith.constant 0 : i32
    return %arg0, %arg1, %c0_i32 : i32, i32, i32
  }
  func.func @transform_1(%arg0: i32, %arg1: i32) -> (i32, i32) {
    %c0_i32 = arith.constant 0 : i32
    %c0_i32_0 = arith.constant 0 : i32
    %c0_i32_1 = arith.constant 0 : i32
    return %c0_i32, %c0_i32_0 : i32, i32
  }
  func.func @transform_2(%arg0: i32, %arg1: i32) -> (i32, i32) {
    %c0_i32 = arith.constant 0 : i32
    %c0_i32_0 = arith.constant 0 : i32
    %c0_i32_1 = arith.constant 0 : i32
    return %c0_i32, %c0_i32_0 : i32, i32
  }
  func.func @transform_3(%arg0: i32, %arg1: i32) -> (i32, i32) {
    %c0_i32 = arith.constant 0 : i32
    %c0_i32_0 = arith.constant 0 : i32
    %c0_i32_1 = arith.constant 0 : i32
    return %c0_i32, %c0_i32_0 : i32, i32
  }
  func.func @transform_4(%arg0: i32, %arg1: i32) -> (i32, i32) {
    %c0_i32 = arith.constant 0 : i32
    %c0_i32_0 = arith.constant 0 : i32
    return %arg0, %c0_i32 : i32, i32
  }
}

</mosaic_0001>

<bundles_post_ra>
// kernel: tpu_custom_call.1
= control target key start
LH: loop header
LB: loop body
LE: loop exit
PB: predicated region body
PF: predicated region fallthrough
CT: control target
= control target key end

     0   :  { %9 = vsyncpa [#allocation4], 0  ;;  %s1311_s0 = inlined_call_operand.vmem [shape: s32[16,16,1], index: 0, kind: input, shape index: {}]   ;;  %s1312_s1 = inlined_call_operand.vmem [shape: bf16[128,128], index: 1, kind: input, shape index: {}]   ;;  %s1313_s2 = inlined_call_operand.vmem [shape: bf16[128,128], index: 2, kind: input, shape index: {}]   ;;  %s1314_s3 = inlined_call_operand.vmem [shape: f32[1,128], index: 3, kind: input, shape index: {}]   ;;  %s1315_s4 = inlined_call_operand.hbm [shape: f32[16,128], index: 4, kind: output, shape index: {}]  }
   0x1   :  { %11 = vsyncpa [#allocation4 + $0x1], 0  ;;  %s1131_s15 = smov 0   ;;  %s1133_s16 = smov 0  }
   0x2   :  { %s1135_s17 = smov 0   ;;  %s1137_s18 = smov 0  }
   0x3   :  { %s1139_s19 = smov 0   ;;  %s1141_s20 = smov 0  }
   0x4 LB: > { %s804_s21 = sadd.s32 4294967295, %s1099_s20   ;;  %s805_s22 = sadd.s32 4294967294, %s1099_s20   ;;  %s1099_s20 = sphi %s1141_s20, %s17_s20   ;;  %s1095_s19 = sphi %s1139_s19, %s1322_s19   ;;  %s1091_s18 = sphi %s1137_s18, %s1321_s18   ;;  %s1087_s17 = sphi %s1135_s17, %s1320_s17   ;;  %s1083_s16 = sphi %s1133_s16, %s1319_s16   ;;  %s1079_s15 = sphi %s1131_s15, %s1318_s15  }
   0x5   : > { %s29_s23 = sadd.s32 1, %s1095_s19  ;;  %s127_s24 = sadd.s32 1, %s1087_s17 }
   0x6   : > { %p31_p0 = scmp.ge.s32.totalorder %s29_s23, 2  ;;  %p137_p1 = scmp.ne.s32.totalorder %s1087_s17, %s1083_s16 }
   0x7   : > { %p138_p2 = scmp.eq.s32.totalorder %s804_s21, 1  ;;  %p143_p3 = scmp.ne.s32.totalorder %s1083_s16, %s1079_s15 }
   0x8   : > { %s1324_s23 = smov (%p31_p0, %s29_s23), 0  ;;  %p144_p5 = scmp.eq.s32.totalorder %s805_s22, 1 }
   0x9   : > { %p1171_p4 = por %p138_p2, %p137_p1  ;;  %s124_s26 = ssub.s32 %s1095_s19, %s1324_s23 }
   0xa   : > { %p808_p6 = scmp.ge.s32.totalorder %s1099_s20, 1  ;;  %p125_p7 = scmp.eq.s32.totalorder %s124_s26, 0 }
   0xb   : > { %p1178_p8 = por %p144_p5, %p143_p3  ;;  %p186_p9 = scmp.lt.s32.totalorder %s1099_s20, 3 }
   0xc   : > { %s1184_s28 = scalar_select %p125_p7, %s1087_s17, %s127_s24  }
   0xd   : > { %p187_p10 = pnand %p808_p6, %p186_p9 }
   0xe   : > { %s810_s29 = sshll.u32 (!%p187_p10), %s1091_s18, 3  ;;  %v1101_v0 = vmov (!%p187_p10), 0   ;;  %v1005_v1 = vld [vmem:[%s1312_s1] sm:$0xff] (!%p187_p10)   ;;  %v1006_v2 = vld [vmem:[%s1312_s1 + $0x8] sm:$0xff] (!%p187_p10)   ;;  %v1007_v3 = vld [vmem:[%s1312_s1 + $0x10] sm:$0xff] (!%p187_p10)   ;;  %v251_v25 = vlaneseq (!%p187_p10)  ;;  %v1103_v45 = vmov (!%p187_p10), 0.0  }
   0xf   : > { %190 = sbr.rel (%p187_p10) target bundleno = 649 (0x289), region = 36  ;;  %1004 = vset.pattern.permute.xlu1 (!%p187_p10), %v1101_v0  ;;  %1003 = vset.pattern.permute.xlu0 (!%p187_p10), %v1101_v0  ;;  %p219_p11 = scmp.lt.s32.totalorder (!%p187_p10), %s810_s29, 15  ;;  %v1008_v8 = vld [vmem:[%s1312_s1 + $0x18] sm:$0xff] (!%p187_p10)   ;;  %v1009_v11 = vld [vmem:[%s1312_s1 + $0x20] sm:$0xff] (!%p187_p10)   ;;  %v1010_v14 = vld [vmem:[%s1312_s1 + $0x28] sm:$0xff] (!%p187_p10)  }
  0x10   : > { %892 = vmatprep.subr.bf16.mxu0 (!%p187_p10), %v1005_v1  ;;  %v1011_v17 = vld [vmem:[%s1312_s1 + $0x30] sm:$0xff] (!%p187_p10)   ;;  %v1012_v20 = vld [vmem:[%s1312_s1 + $0x38] sm:$0xff] (!%p187_p10)   ;;  %v252_v28 = vand.u32 (!%p187_p10), 127, %v251_v25  ;;  %v1102_v31 = vmov (!%p187_p10), 1.0|1.0   ;;  %v1013_v44 = vld [vmem:[%s1313_s2] sm:$0xff] (!%p187_p10)   ;;  %924 = vmatprep.subr.bf16.mxu1 (!%p187_p10), %v1103_v45 }
  0x11   : > { %893 = vmatpush3.bf16.msra.mxu0 (!%p187_p10), %v1005_v1  ;;  %925 = vmatpush3.bf16.msra.mxu1 (!%p187_p10), %v1013_v44  ;;  %v1014_v46 = vld [vmem:[%s1313_s2 + $0x8] sm:$0xff] (!%p187_p10)   ;;  %v1015_v47 = vld [vmem:[%s1313_s2 + $0x10] sm:$0xff] (!%p187_p10)   ;;  %v1016_v48 = vld [vmem:[%s1313_s2 + $0x18] sm:$0xff] (!%p187_p10)   ;;  %s863_s12 = sshll.u32 (!%p187_p10), %s1091_s18, 7 }
  0x12   : > { %894 = vmatprep.subr.bf16.mxu0 (!%p187_p10), %v1006_v2  ;;  %926 = vmatprep.subr.bf16.mxu1 (!%p187_p10), %v1103_v45  ;;  %v1017_v49 = vld [vmem:[%s1313_s2 + $0x20] sm:$0xff] (!%p187_p10)   ;;  %v1018_v50 = vld [vmem:[%s1313_s2 + $0x28] sm:$0xff] (!%p187_p10)   ;;  %v1019_v51 = vld [vmem:[%s1313_s2 + $0x30] sm:$0xff] (!%p187_p10)   ;;  %s1264_s24 = scalar_lea.hbm (!%p187_p10), %s1315_s4, %s863_s12 }
  0x13   : > { %v1020_v52 = vld [vmem:[%s1313_s2 + $0x38] sm:$0xff] (!%p187_p10)  }
  0x15   : > { %895 = vmatpush3.bf16.msra.mxu0 (!%p187_p10), %v1006_v2  ;;  %927 = vmatpush3.bf16.msra.mxu1 (!%p187_p10), %v1014_v46 }
  0x16   : > { %s1326_s29 = smov (!%p219_p11, %s810_s29), 15  ;;  %896 = vmatprep.subr.bf16.mxu0 %v1007_v3  ;;  %928 = vmatprep.subr.bf16.mxu1 %v1103_v45 }
  0x17   : > { %s866_s8 = sshll.u32 %s1326_s29, 4  ;;  %s1105_s29 = smov [#allocation3]  }
  0x18   : > { %s1196_s11 = scalar_lea.vmem %s1311_s0, %s866_s8  ;;  %s214_s8 = sand.u32 1, %s1083_s16  }
  0x19   : > { %v237_v4 = vld [vmem:[%s1196_s11 + $0x10] sm:$0xff]  ;;  %v235_v5 = vld [vmem:[%s1196_s11] sm:$0xff]  ;;  %v238_v6 = vld [vmem:[%s1196_s11 + $0x18] sm:$0xff]  ;;  %897 = vmatpush3.bf16.msra.mxu0 %v1007_v3  ;;  %929 = vmatpush3.bf16.msra.mxu1 %v1015_v47  ;;  %s809_s9 = sshll.u32 %s214_s8, 3  ;;  %s718_s26 = scalar_lea.sflag [#allocation4], %s214_s8 }
  0x1a   : > { %260 = vperm.xlu1 %1004, %v237_v4   ;;  %254 = vperm.xlu0 %1003, %v235_v5   ;;  %v236_v7 = vld [vmem:[%s1196_s11 + $0x8] sm:$0xff]  ;;  %v239_v10 = vld [vmem:[%s1196_s11 + $0x20] sm:$0xff]  ;;  %v242_v12 = vld [vmem:[%s1196_s11 + $0x38] sm:$0xff]  ;;  %s216_s13 = scalar_lea.vmem [#allocation3], %s809_s9  ;;  %s1025_s30 = sshll.u32 %s1105_s29, 4  ;;  %s1026_s30 = int_to_ptr.vmem [resolvable:$false] %s1025_s30 }
  0x1b   : > { %v240_v9 = vld [vmem:[%s1196_s11 + $0x28] sm:$0xff]  ;;  %898 = vmatprep.subr.bf16.mxu0 %v1008_v8  ;;  %v241_v13 = vld [vmem:[%s1196_s11 + $0x30] sm:$0xff]  ;;  %v243_v16 = vld [vmem:[%s1196_s11 + $0x40] sm:$0xff]  ;;  %930 = vmatprep.subr.bf16.mxu1 %v1103_v45  ;;  %s731_s14 = sshll.u32 %s216_s13, 4  ;;  %s1027_s5 = scalar_lea.vmem %s1026_s30, 256  ;;  %s1266_s14 = int_to_ptr.vmem [resolvable:$true] %s731_s14 }
  0x1c   : > { %v244_v15 = vld [vmem:[%s1196_s11 + $0x48] sm:$0xff]  ;;  %v246_v18 = vld [vmem:[%s1196_s11 + $0x58] sm:$0xff]  ;;  %v245_v19 = vld [vmem:[%s1196_s11 + $0x50] sm:$0xff]  ;;  %s1021_s18 = scalar_lea.vmem %s1266_s14, 128  ;;  %p1028_p1 = scmp.lt.s32.totalorder %s1266_s14, %s1026_s30 }
  0x1d   : > { %899 = vmatpush3.bf16.msra.mxu0 %v1008_v8  ;;  %v248_v21 = vld [vmem:[%s1196_s11 + $0x68] sm:$0xff]  ;;  %v247_v22 = vld [vmem:[%s1196_s11 + $0x60] sm:$0xff]  ;;  %v250_v23 = vld [vmem:[%s1196_s11 + $0x78] sm:$0xff]  ;;  %931 = vmatpush3.bf16.msra.mxu1 %v1016_v48  ;;  %p1022_p12 = scmp.ne.s32.totalorder %s1266_s14, %s1021_s18  ;;  %p1029_p2 = scmp.lt.s32.totalorder %s1027_s5, %s1021_s18 }
  0x1e   : > { %263 = vperm.xlu1 %1004, %v238_v6   ;;  %257 = vperm.xlu0 %1003, %v236_v7   ;;  %v249_v24 = vld [vmem:[%s1196_s11 + $0x70] sm:$0xff] }
  0x1f   : > { %900 = vmatprep.subr.bf16.mxu0 %v1009_v11  ;;  %932 = vmatprep.subr.bf16.mxu1 %v1103_v45  ;;  %p1023_p13 = pnand %p1022_p12, %p1171_p4  ;;  %p1030_p3 = por %p1029_p2, %p1028_p1 }
  0x21   : > { %901 = vmatpush3.bf16.msra.mxu0 %v1009_v11  ;;  %933 = vmatpush3.bf16.msra.mxu1 %v1017_v49  ;;  %p1024_p0 = pneg %p1023_p13 }
  0x22   : > { %269 = vperm.xlu1 %1004, %v240_v9   ;;  %266 = vperm.xlu0 %1003, %v239_v10  }
  0x23   : > { %902 = vmatprep.subr.bf16.mxu0 %v1010_v14  ;;  %934 = vmatprep.subr.bf16.mxu1 %v1103_v45  ;;  %p1031_p5 = pnand %p1030_p3, %p1024_p0 }
  0x25   : > { %903 = vmatpush3.bf16.msra.mxu0 %v1010_v14  ;;  %935 = vmatpush3.bf16.msra.mxu1 %v1018_v50 }
  0x26   : > { %275 = vperm.xlu1 %1004, %v242_v12   ;;  %272 = vperm.xlu0 %1003, %v241_v13  }
  0x27   : > { %904 = vmatprep.subr.bf16.mxu0 %v1011_v17  ;;  %936 = vmatprep.subr.bf16.mxu1 %v1103_v45 }
  0x29   : > { %905 = vmatpush3.bf16.msra.mxu0 %v1011_v17  ;;  %937 = vmatpush3.bf16.msra.mxu1 %v1019_v51 }
  0x2a   : > { %281 = vperm.xlu1 %1004, %v244_v15   ;;  %278 = vperm.xlu0 %1003, %v243_v16  }
  0x2b   : > { %906 = vmatprep.subr.bf16.mxu0 %v1012_v20  ;;  %938 = vmatprep.subr.bf16.mxu1 %v1103_v45 }
  0x2d   : > { %907 = vmatpush3.bf16.msra.mxu0 %v1012_v20  ;;  %939 = vmatpush3.bf16.msra.mxu1 %v1020_v52 }
  0x2e   : > { %287 = vperm.xlu1 %1004, %v246_v18   ;;  %284 = vperm.xlu0 %1003, %v245_v19  }
  0x32   : > { %293 = vperm.xlu1 %1004, %v248_v21   ;;  %290 = vperm.xlu0 %1003, %v247_v22  }
  0x36   : > { %299 = vperm.xlu1 %1004, %v250_v23   ;;  %296 = vperm.xlu0 %1003, %v249_v24  }
  0x99   : > { %v261_v26 = vpop.permute.xlu1 %260  ;;  %v255_v27 = vpop.permute.xlu0 %254 }
  0x9a   : > { %vm303_vm0 = vcmp.eq.s32.totalorder %v261_v26, %v252_v28  ;;  %vm301_vm3 = vcmp.eq.s32.totalorder %v255_v27, %v252_v28 }
  0x9d   : > { %v264_v29 = vpop.permute.xlu1 %263  ;;  %v258_v30 = vpop.permute.xlu0 %257 }
  0x9e   : > { %vm304_vm1 = vcmp.eq.s32.totalorder %v264_v29, %v252_v28  ;;  %vm302_vm2 = vcmp.eq.s32.totalorder %v258_v30, %v252_v28 }
  0x9f   : > { %vm839_vm4 = vmpackc.low %vm304_vm1, %vm303_vm0 }
  0xa0   : > { %vm837_vm5 = vmpackc.low %vm302_vm2, %vm301_vm3 }
  0xa1   : > { %908 = vmatprep.mubr.msk.bf16.mxu0 %vm837_vm5, %v1102_v31  ;;  %v270_v32 = vpop.permute.xlu1 %269  ;;  %v267_v33 = vpop.permute.xlu0 %266 }
  0xa2   : > { %vm306_vm6 = vcmp.eq.s32.totalorder %v270_v32, %v252_v28  ;;  %909 = vmatmul.mubr.msk.bf16.vlgmr.msra.gmra.mrb[0].mxu0 %vm839_vm4, %v1102_v31  ;;  %vm305_vm7 = vcmp.eq.s32.totalorder %v267_v33, %v252_v28 }
  0xa3   : > { %vm841_vm8 = vmpackc.low %vm306_vm6, %vm305_vm7 }
  0xa4   : > { %912 = vmatprep.mubr.msk.bf16.mxu0 %vm841_vm8, %v1102_v31  ;;  %vm1104_vm8 = vmmov 0  }
  0xa5   : > { %v276_v34 = vpop.permute.xlu1 %275  ;;  %v273_v35 = vpop.permute.xlu0 %272  ;;  %940 = vmatprep.mubr.msk.bf16.mxu1 %vm1104_vm8, %v1103_v45 }
  0xa6   : > { %vm308_vm9 = vcmp.eq.s32.totalorder %v276_v34, %v252_v28  ;;  %vm307_vm10 = vcmp.eq.s32.totalorder %v273_v35, %v252_v28 }
  0xa7   : > { %vm843_vm11 = vmpackc.low %vm308_vm9, %vm307_vm10  ;;  %vm583_vm9 = vcmask 1041409   ;;  %vm585_vm10 = vcmask 1042434  }
  0xa9   : > { %v282_v36 = vpop.permute.xlu1 %281  ;;  %v279_v37 = vpop.permute.xlu0 %278 }
  0xaa   : > { %vm310_vm12 = vcmp.eq.s32.totalorder %v282_v36, %v252_v28  ;;  %913 = vmatmul.mubr.msk.bf16.gmra.mrb[4].mxu0 %vm843_vm11, %v1102_v31  ;;  %vm309_vm13 = vcmp.eq.s32.totalorder %v279_v37, %v252_v28  ;;  %vm587_vm11 = vcmask 1043459  }
  0xab   : > { %vm845_vm14 = vmpackc.low %vm310_vm12, %vm309_vm13  ;;  %vm589_vm12 = vcmask 1044484   ;;  %vm591_vm13 = vcmask 1045509  }
  0xac   : > { %916 = vmatprep.mubr.msk.bf16.mxu0 %vm845_vm14, %v1102_v31  ;;  %vm593_vm14 = vcmask 1046534  }
  0xad   : > { %v288_v38 = vpop.permute.xlu1 %287  ;;  %v285_v39 = vpop.permute.xlu0 %284 }
  0xae   : > { %vm312_vm15 = vcmp.eq.s32.totalorder %v288_v38, %v252_v28  ;;  %vm311_vm0 = vcmp.eq.s32.totalorder %v285_v39, %v252_v28 }
  0xaf   : > { %vm847_vm1 = vmpackc.low %vm312_vm15, %vm311_vm0  ;;  %vm595_vm15 = vcmask 1047559  }
  0xb1   : > { %v294_v40 = vpop.permute.xlu1 %293  ;;  %v291_v41 = vpop.permute.xlu0 %290 }
  0xb2   : > { %vm314_vm2 = vcmp.eq.s32.totalorder %v294_v40, %v252_v28  ;;  %917 = vmatmul.mubr.msk.bf16.gmra.mrb[8].mxu0 %vm847_vm1, %v1102_v31  ;;  %vm313_vm3 = vcmp.eq.s32.totalorder %v291_v41, %v252_v28 }
  0xb3   : > { %vm849_vm4 = vmpackc.low %vm314_vm2, %vm313_vm3 }
  0xb4   : > { %920 = vmatprep.mubr.msk.bf16.mxu0 %vm849_vm4, %v1102_v31 }
  0xb5   : > { %v300_v42 = vpop.permute.xlu1 %299  ;;  %v297_v43 = vpop.permute.xlu0 %296 }
  0xb6   : > { %vm316_vm5 = vcmp.eq.s32.totalorder %v300_v42, %v252_v28  ;;  %vm315_vm6 = vcmp.eq.s32.totalorder %v297_v43, %v252_v28 }
  0xb7   : > { %vm851_vm7 = vmpackc.low %vm316_vm5, %vm315_vm6 }
  0xba   : > { %921 = vmatmul.mubr.msk.bf16.gmra.mrb[12].mxu0 %vm851_vm7, %v1102_v31 }
 0x175   : > { %v910_v53 = vpop.f32.mrb[0].mxu0 }
 0x176   : > { %v455_v54 = vpop.f32.mrb[1].mxu0 }
 0x177   : > { %v911_v55 = vpop.f32.mrb[2].mxu0 }
 0x178   : > { %v526_v56 = vmax.f32 %v910_v53, %v911_v55  ;;  %v458_v57 = vpop.f32.mrb[3].mxu0 }
 0x179   : > { %v519_v58 = vmax.f32 %v455_v54, %v458_v57 }
 0x17a   : > { %v527_v59 = vrot.slane %v526_v56, 4 }
 0x17b   : > { %v520_v60 = vrot.slane %v519_v58, 4 }
 0x17c   : > { %v528_v61 = vmax.f32 %v526_v56, %v527_v59 }
 0x17d   : > { %v521_v62 = vmax.f32 %v519_v58, %v520_v60  ;;  %v914_v63 = vpop.f32.mrb[4].mxu0 }
 0x17e   : > { %v529_v0 = vrot.slane %v528_v61, 2  ;;  %v471_v1 = vpop.f32.mrb[5].mxu0 }
 0x17f   : > { %v522_v2 = vrot.slane %v521_v62, 2  ;;  %v915_v3 = vpop.f32.mrb[6].mxu0 }
 0x180   : > { %v530_v4 = vmax.f32 %v528_v61, %v529_v0  ;;  %v540_v5 = vmax.f32 %v914_v63, %v915_v3  ;;  %v474_v6 = vpop.f32.mrb[7].mxu0 }
 0x181   : > { %v523_v7 = vmax.f32 %v521_v62, %v522_v2  ;;  %v533_v8 = vmax.f32 %v471_v1, %v474_v6  ;;  %v853_v6 = vld [vmem:[%s1314_s3] ss:$0 sm:$0xff] }
 0x182   : > { %v531_v9 = vrot.slane %v530_v4, 1  ;;  %v541_v10 = vrot.slane %v540_v5, 4 }
 0x183   : > { %v524_v11 = vrot.slane %v523_v7, 1  ;;  %v534_v12 = vrot.slane %v533_v8, 4 }
 0x184   : > { %v532_v13 = vmax.f32 %v530_v4, %v531_v9  ;;  %v542_v14 = vmax.f32 %v540_v5, %v541_v10 }
 0x185   : > { %v525_v15 = vmax.f32 %v523_v7, %v524_v11  ;;  %v535_v16 = vmax.f32 %v533_v8, %v534_v12  ;;  %v918_v17 = vpop.f32.mrb[8].mxu0 }
 0x186   : > { %v543_v18 = vrot.slane %v542_v14, 2  ;;  %v487_v19 = vpop.f32.mrb[9].mxu0 }
 0x187   : > { %v584_v20 = vsel %vm583_vm9, %v532_v13, %v525_v15  ;;  %v536_v21 = vrot.slane %v535_v16, 2  ;;  %v919_v22 = vpop.f32.mrb[10].mxu0 }
 0x188   : > { %v544_v23 = vmax.f32 %v542_v14, %v543_v18  ;;  %v554_v24 = vmax.f32 %v918_v17, %v919_v22  ;;  %v490_v25 = vpop.f32.mrb[11].mxu0 }
 0x189   : > { %v537_v26 = vmax.f32 %v535_v16, %v536_v21  ;;  %v547_v27 = vmax.f32 %v487_v19, %v490_v25 }
 0x18a   : > { %v545_v28 = vrot.slane %v544_v23, 1  ;;  %v555_v29 = vrot.slane %v554_v24, 4 }
 0x18b   : > { %v538_v30 = vrot.slane %v537_v26, 1  ;;  %v548_v31 = vrot.slane %v547_v27, 4 }
 0x18c   : > { %v556_v32 = vmax.f32 %v554_v24, %v555_v29  ;;  %v546_v36 = vmax.f32 %v544_v23, %v545_v28 }
 0x18d   : > { %v539_v33 = vmax.f32 %v537_v26, %v538_v30  ;;  %v549_v34 = vmax.f32 %v547_v27, %v548_v31  ;;  %v922_v35 = vpop.f32.mrb[12].mxu0 }
 0x18e   : > { %v557_v37 = vrot.slane %v556_v32, 2  ;;  %v503_v38 = vpop.f32.mrb[13].mxu0 }
 0x18f   : > { %v586_v39 = vsel %vm585_vm10, %v539_v33, %v584_v20  ;;  %v550_v40 = vrot.slane %v549_v34, 2  ;;  %v923_v41 = vpop.f32.mrb[14].mxu0 }
 0x190   : > { %v558_v42 = vmax.f32 %v556_v32, %v557_v37  ;;  %v588_v43 = vsel %vm587_vm11, %v546_v36, %v586_v39  ;;  %v568_v44 = vmax.f32 %v922_v35, %v923_v41  ;;  %v506_v45 = vpop.f32.mrb[15].mxu0 }
 0x191   : > { %v551_v46 = vmax.f32 %v549_v34, %v550_v40  ;;  %v561_v47 = vmax.f32 %v503_v38, %v506_v45 }
 0x192   : > { %v559_v48 = vrot.slane %v558_v42, 1  ;;  %v569_v49 = vrot.slane %v568_v44, 4 }
 0x193   : > { %v552_v50 = vrot.slane %v551_v46, 1  ;;  %v562_v51 = vrot.slane %v561_v47, 4 }
 0x194   : > { %v570_v52 = vmax.f32 %v568_v44, %v569_v49  ;;  %v560_v55 = vmax.f32 %v558_v42, %v559_v48 }
 0x195   : > { %v553_v53 = vmax.f32 %v551_v46, %v552_v50  ;;  %v563_v54 = vmax.f32 %v561_v47, %v562_v51 }
 0x196   : > { %v571_v56 = vrot.slane %v570_v52, 2 }
 0x197   : > { %v590_v57 = vsel %vm589_vm12, %v553_v53, %v588_v43  ;;  %v564_v58 = vrot.slane %v563_v54, 2 }
 0x198   : > { %v572_v59 = vmax.f32 %v570_v52, %v571_v56  ;;  %v592_v60 = vsel %vm591_vm13, %v560_v55, %v590_v57 }
 0x199   : > { %v565_v61 = vmax.f32 %v563_v54, %v564_v58 }
 0x19a   : > { %v573_v62 = vrot.slane %v572_v59, 1 }
 0x19b   : > { %v566_v63 = vrot.slane %v565_v61, 1 }
 0x19c   : > { %v574_v1 = vmax.f32 %v572_v59, %v573_v62 }
 0x19d   : > { %v567_v0 = vmax.f32 %v565_v61, %v566_v63 }
 0x19f   : > { %v594_v2 = vsel %vm593_vm14, %v567_v0, %v592_v60 }
 0x1a0   : > { %v596_v3 = vsel %vm595_vm15, %v574_v1, %v594_v2 }
 0x1a1   : > { %v598_v4 = vmax.f32 %v596_v3, 0.0 }
 0x1a3   : > { %v604_v5 = vpack.c.bf16 %v598_v4, %v598_v4 }
 0x1a5   : > { %941 = vmatmul.mubr.bf16.vlgmr.msra.gmra.mrb[0].mxu1 %v604_v5 }
 0x278   : > { %v710_v7 = vpop.f32.mrb[0].mxu1 }
 0x279   : > { %v711_v8 = vadd.f32 %v853_v6, %v710_v7  ;;  %v942_v9 = vpop.f32.mrb[1].mxu1 }
 0x27a   : > { %v713_v10 = vpop.f32.mrb[2].mxu1 }
 0x27b   : > { %716 = vst [vmem:[%s216_s13] sm:$0xff] %v711_v8  ;;  %v943_v11 = vpop.f32.mrb[3].mxu1 }
 0x27c   : > { %1034 = shalt.err (!%p1031_p5)
}
 0x27d   : > { %s1035_s6 = scalar_lea.hbm %s1264_s24, 128  ;;  %s1039_s9 = scalar_lea.hbm %s1315_s4, 256 }
 0x27e   : > { %p1036_p6 = scmp.ne.s32.totalorder %s1264_s24, %s1035_s6  ;;  %p1040_p10 = scmp.lt.u32.totalorder %s1264_s24, %s1315_s4 }
 0x27f   : > { %p1041_p11 = scmp.lt.u32.totalorder %s1039_s9, %s1035_s6  ;;  %p1043_p13 = scmp.lt.u32.totalorder %s1035_s6, %s1264_s24 }
 0x280   : > { %p1037_p7 = pnand %p1036_p6, %p1171_p4 }
 0x281   : > { %p1042_p12 = por %p1041_p11, %p1040_p10 }
 0x282   : > { %p1038_p9 = pneg %p1037_p7 }
 0x283   : > { %p1044_p0 = por %p1043_p13, %p1042_p12 }
 0x285   : > { %p1045_p1 = pnand %p1044_p0, %p1038_p9 }
 0x287   : > { %1048 = shalt.err (!%p1045_p1)
}
 0x288   : > { %944 = dma.vmem_to_hbm [thread:$0]  (%p1171_p4), %s1266_s14, 128, %s1264_s24, %s718_s26  }
 0x289 PF: > { %p950_p2 = scmp.ge.s32.totalorder %s1099_s20, 2  ;;  %s743_s12 = sand.u32 1, %s1079_s15  }
 0x28a   : > { %s744_s13 = scalar_lea.sflag [#allocation4], %s743_s12 }
 0x28b   : > { %p947_p3 = pnand %p950_p2, %p1178_p8 }
 0x28d   : > { %1074 = dma.done.wait (!%p947_p3), %s744_s13, 128  }
 0x28e   : > { %1076 = vsyncadd (!%p947_p3), %s744_s13, 4294967168  ;;  %s17_s20 = sadd.s32 1, %s1099_s20   ;;  %s1318_s15 = smov %s1083_s16 }
 0x28f   : > { %p14_p5 = scmp.ge.s32.totalorder %s17_s20, 4   ;;  %s1319_s16 = smov %s1087_s17 }
 0x290   : > { %s1320_s17 = smov %s1184_s28  ;;  %s1321_s18 = smov %s1095_s19 }
 0x291   : > { %s1322_s19 = smov %s1324_s23  ;;  %16 = sbr.rel (!%p14_p5) target bundleno = 4 (0x4), region = 79 }
 0x298   :  { %749 = vsyncpa [#allocation4], 1 }
 0x299   :  { %751 = vsyncpa [#allocation4 + $0x1], 1 }

</bundles_post_ra>
